<compile_context>
chip_gen: v7x
topology: tpu7x:2x2x1
jax: 0.10.0
libtpu: 0.0.40
codegen_flags: <defaults>
</compile_context>

<pallas_src>
import functools

import jax
import jax.numpy as jnp
from jax.experimental import pallas as pl
from jax.experimental.pallas import tpu as pltpu


def _encoder_kernel(x_ref, w1_ref, b1_ref, w2_ref, b2_ref, o_ref,
                    h1e_ref, h1o_ref, *, Lr, TLr):
    """One (batch, pooled-length tile) element per grid step.

    x_ref  : (1, 1, 2, TLr+2) deinterleaved signal rows (row 0 even, row 1 odd
             samples) with a 1-element halo on each side; local index i maps to
             global pooled index g = t*TLr + i - 1 (zeros outside [0, Lr)).
    w1_ref : (C1, 3)   conv1 weight (channel, tap)
    b1_ref : (C1, 1)
    w2_ref : (3, C2, C1) conv2 weight (tap, Cout, Cin)
    b2_ref : (C2, 1)
    o_ref  : (1, C2, TLr) pooled output tile (lane-dense)
    h1e_ref/h1o_ref : VMEM scratch (C1, TLr+1) -- conv1 activations at even/odd
             positions needed by this tile's conv2 outputs.
    """
    t = pl.program_id(1)
    jt = t * TLr
    W = TLr + 1

    xall = x_ref[0, 0]                     # (2, TLr+2)
    xe = xall[0:1, :]                      # even samples, (1, TLr+2)
    xo = xall[1:2, :]                      # odd samples,  (1, TLr+2)

    w10 = w1_ref[:, 0:1]                   # (C1, 1)
    w11 = w1_ref[:, 1:2]
    w12 = w1_ref[:, 2:3]
    b1c = b1_ref[...]                      # (C1, 1)

    # ---- conv1 + ReLU on the VPU: broadcast FMAs of shifted signal views ----
    # h1 at even position 2g  (g = jt + m):        taps x[2g-1], x[2g],   x[2g+1]
    h1e = jnp.maximum(
        w10 * xo[:, 0:W] + w11 * xe[:, 1:W + 1] + w12 * xo[:, 1:W + 1] + b1c, 0.0)
    # h1 at odd position 2g+1 (g = jt + m - 1):    taps x[2g],   x[2g+1], x[2g+2]
    h1o = jnp.maximum(
        w10 * xe[:, 0:W] + w11 * xo[:, 0:W] + w12 * xe[:, 1:W + 1] + b1c, 0.0)

    # Columns whose h1 position falls in conv2's zero padding (sequence ends /
    # padded ragged tail) must be exactly zero.  Cheap lane-mask on the VPU;
    # only boundary tiles actually flip anything.
    m = jax.lax.broadcasted_iota(jnp.int32, (1, W), 1)
    ge = jt + m                                        # global g of h1e column m
    go = ge - 1                                        # global g of h1o column m
    h1e_ref[...] = jnp.where(ge < Lr, h1e, 0.0)
    h1o_ref[...] = jnp.where((go >= 0) & (go < Lr), h1o, 0.0)

    # ---- conv2 as (C2,C1)@(C1,TLr) MXU matmuls, split into even/odd streams ----
    W20 = w2_ref[0]                        # (C2, C1)
    W21 = w2_ref[1]
    W22 = w2_ref[2]
    h1e_a = h1e_ref[:, pl.ds(0, TLr)]      # h1 at even position of pooled idx q
    h1e_b = h1e_ref[:, pl.ds(1, TLr)]      # h1 at even position of pooled idx q+1
    h1o_a = h1o_ref[:, pl.ds(0, TLr)]      # h1 at odd  position of pooled idx q-1
    h1o_b = h1o_ref[:, pl.ds(1, TLr)]      # h1 at odd  position of pooled idx q

    f32 = jnp.float32
    # h2 at even output position 2(jt+q)
    acc_e = (jnp.dot(W20, h1o_a, preferred_element_type=f32)
             + jnp.dot(W21, h1e_a, preferred_element_type=f32)
             + jnp.dot(W22, h1o_b, preferred_element_type=f32))
    # h2 at odd output position 2(jt+q)+1
    acc_o = (jnp.dot(W20, h1e_a, preferred_element_type=f32)
             + jnp.dot(W21, h1o_b, preferred_element_type=f32)
             + jnp.dot(W22, h1e_b, preferred_element_type=f32))

    # MaxPool1d(2,2): relu(x + b2) is monotone, so the pairwise max commutes
    # with bias + ReLU -> one max, one add, one relu.  Lane-dense (C2, TLr) store.
    o_ref[0] = jnp.maximum(jnp.maximum(acc_e, acc_o) + b2_ref[...], 0.0).astype(o_ref.dtype)


def classical_encoder_forward(x, params, *, chunk=None, pooled_dtype=jnp.float32):
    """x: (B, 1, L) float32, PyTorch NCL layout. Returns (B, latent).

    chunk: length-tile size (number of un-pooled samples per grid step); the
    pooled tile is chunk//2.  When tiling (more than one tile), chunk must be a
    multiple of 256 so output blocks stay lane-aligned.  The pooled axis is
    padded to a whole number of tiles and masked, so arbitrary even L works
    (e.g. production L = 35490 -> Lr = 17745).
    """
    w1, b1, w2, b2, wfc, bfc = params
    B, cin, L = x.shape
    assert cin == 1
    # TODO(synk): odd L (PyTorch pool drops the last sample) not needed for this module.
    assert L % 2 == 0
    C1 = w1.shape[0]
    C2 = w2.shape[0]
    Lr = L // 2

    # ---- pooled-tile size ----
    if chunk is None:
        TLr = Lr if Lr <= 2048 else 2048
    else:
        assert chunk % 2 == 0
        TLr = chunk // 2
    nT = -(-Lr // TLr)
    if nT > 1:
        assert TLr % 128 == 0, "when tiling, chunk must be a multiple of 256"
    Lr_pad = nT * TLr

    # ---- tiny weight re-layouts (the large fc.weight is used as-is) ----
    w1c = w1[:, 0, :]                        # (C1, 3)
    b1c = b1.reshape(C1, 1)
    w2t = jnp.transpose(w2, (2, 0, 1))       # (3, C2, C1)
    b2c = b2.reshape(C2, 1)

    # ---- deinterleave the signal into even/odd streams with a 1-elem halo ----
    xf = x[:, 0, :]                          # (B, L)
    xe = xf[:, 0::2]                         # (B, Lr)
    xo = xf[:, 1::2]                         # (B, Lr)
    pad_r = Lr_pad - Lr + 1
    xep = jnp.pad(xe, ((0, 0), (1, pad_r)))  # (B, Lr_pad+2); index i -> pooled g=i-1
    xop = jnp.pad(xo, ((0, 0), (1, pad_r)))
    xd = jnp.stack([xep, xop], axis=1)       # (B, 2, Lr_pad+2)
    idx = (jnp.arange(nT) * TLr)[:, None] + jnp.arange(TLr + 2)[None, :]
    xt = jnp.transpose(xd[:, :, idx], (0, 2, 1, 3))      # (B, nT, 2, TLr+2)

    kernel = functools.partial(_encoder_kernel, Lr=Lr, TLr=TLr)
    pooled = pl.pallas_call(
        kernel,
        out_shape=jax.ShapeDtypeStruct((B, C2, Lr_pad), pooled_dtype),
        grid=(B, nT),
        in_specs=[
            pl.BlockSpec((1, 1, 2, TLr + 2), lambda b, t: (b, t, 0, 0)),
            pl.BlockSpec((C1, 3), lambda b, t: (0, 0)),
            pl.BlockSpec((C1, 1), lambda b, t: (0, 0)),
            pl.BlockSpec((3, C2, C1), lambda b, t: (0, 0, 0)),
            pl.BlockSpec((C2, 1), lambda b, t: (0, 0)),
        ],
        out_specs=pl.BlockSpec((1, C2, TLr), lambda b, t: (b, 0, t)),
        scratch_shapes=[pltpu.VMEM((C1, TLr + 1), jnp.float32),
                        pltpu.VMEM((C1, TLr + 1), jnp.float32)],
        compiler_params=pltpu.CompilerParams(
            dimension_semantics=("parallel", "parallel")),
    )(xt, w1c, b1c, w2t, b2c)

    # ---- fc: pooled layout (B, C2, Lr) already matches PyTorch's flatten order,
    #      so fc.weight is consumed directly (no per-call transpose of ~23 MB).
    if Lr_pad != Lr:
        pooled = pooled[:, :, :Lr]
    flat = pooled.reshape(B, C2 * Lr).astype(jnp.float32)
    out = jax.lax.dot_general(flat, wfc, (((1,), (1,)), ((), ())),
                              precision=jax.lax.Precision.HIGHEST)
    return out + bfc[None, :]


def reference_forward(x, params):
    """Pure-JAX reference reproducing the PyTorch forward exactly."""
    w1, b1, w2, b2, wfc, bfc = params
    y = jax.lax.conv_general_dilated(
        x, w1, window_strides=(1,), padding=[(1, 1)],
        dimension_numbers=("NCH", "OIH", "NCH"),
        precision=jax.lax.Precision.HIGHEST)
    y = jax.nn.relu(y + b1[None, :, None])
    y = jax.lax.conv_general_dilated(
        y, w2, window_strides=(1,), padding=[(1, 1)],
        dimension_numbers=("NCH", "OIH", "NCH"),
        precision=jax.lax.Precision.HIGHEST)
    y = jax.nn.relu(y + b2[None, :, None])
    y = jax.lax.reduce_window(y, -jnp.inf, jax.lax.max,
                              (1, 1, 2), (1, 1, 2), "VALID")     # MaxPool1d(2, 2)
    flat = y.reshape(y.shape[0], -1)                             # (B, C2*Lr), c-major
    return jnp.dot(flat, wfc.T, precision=jax.lax.Precision.HIGHEST) + bfc[None, :]


if __name__ == "__main__":
    B = 2
    input_length = 64            # small stand-in for the production 7098
    L = input_length * 5         # forward expects length == input_length * 5 -> 320
    C1 = 32                      # conv1 out-channels (hard-coded 32 in the module)
    C2 = 32                      # num_channels
    latent = 10                  # latent_dim
    Lr = L // 2                  # pooled length -> flattened_size = C2 * Lr

    key = jax.random.PRNGKey(0)
    ks = jax.random.split(key, 7)
    w1 = jax.random.normal(ks[0], (C1, 1, 3), jnp.float32) * 0.3     # conv1.weight
    b1 = jax.random.normal(ks[1], (C1,), jnp.float32) * 0.1          # conv1.bias
    w2 = jax.random.normal(ks[2], (C2, C1, 3), jnp.float32) * 0.1    # conv2.weight
    b2 = jax.random.normal(ks[3], (C2,), jnp.float32) * 0.1          # conv2.bias
    wfc = jax.random.normal(ks[4], (latent, C2 * Lr), jnp.float32) * 0.05  # fc.weight
    bfc = jax.random.normal(ks[5], (latent,), jnp.float32) * 0.1           # fc.bias
    x = jax.random.normal(ks[6], (B, 1, L), jnp.float32)
    params = (w1, b1, w2, b2, wfc, bfc)

    ref = reference_forward(x, params)

    # Tiled + ragged path: chunk=256 -> pooled tile 128, nT=2, padded tail of 96.
    out = classical_encoder_forward(x, params, chunk=256)
    out = jax.block_until_ready(out)
    assert out.shape == (B, latent), out.shape
    if not jnp.allclose(out, ref, atol=2e-3, rtol=2e-3):
        max_err = float(jnp.max(jnp.abs(out - ref)))
        raise AssertionError(f"Pallas kernel mismatch (tiled) vs reference, max abs err = {max_err}")

    # Single-tile path (default chunk): whole pooled length in one grid step.
    out1 = classical_encoder_forward(x, params)
    out1 = jax.block_until_ready(out1)
    if not jnp.allclose(out1, ref, atol=2e-3, rtol=2e-3):
        max_err = float(jnp.max(jnp.abs(out1 - ref)))
        raise AssertionError(f"Pallas kernel mismatch (single tile) vs reference, max abs err = {max_err}")

    print("KERNEL_OK")
</pallas_src>

<mosaic_0001>
module attributes {stable_mosaic.version = 11 : i64} {
  func.func @_encoder_kernel(%arg0: i32, %arg1: i32, %arg2: memref<1x1x2x130xf32, #tpu.memory_space<vmem>>, %arg3: memref<32x3xf32, #tpu.memory_space<vmem>>, %arg4: memref<32x1xf32, #tpu.memory_space<vmem>>, %arg5: memref<3x32x32xf32, #tpu.memory_space<vmem>>, %arg6: memref<32x1xf32, #tpu.memory_space<vmem>>, %arg7: memref<1x32x128xf32, #tpu.memory_space<vmem>>, %arg8: memref<32x129xf32, #tpu.memory_space<vmem>>, %arg9: memref<32x129xf32, #tpu.memory_space<vmem>>) attributes {dimension_semantics = [#tpu.dimension_semantics<parallel>, #tpu.dimension_semantics<parallel>], iteration_bounds = array<i64: 2, 2>, scalar_prefetch = 0 : i64, scratch_operands = 2 : i64, tpu.core_type = #tpu.core_type<tc>, window_params = [{transform_indices = @transform_0, window_bounds = array<i64: 1, 1, 2, 130>}, {pipeline_mode = #tpu.pipeline_mode<synchronous>, transform_indices = @transform_1, window_bounds = array<i64: 32, 3>}, {pipeline_mode = #tpu.pipeline_mode<synchronous>, transform_indices = @transform_2, window_bounds = array<i64: 32, 1>}, {pipeline_mode = #tpu.pipeline_mode<synchronous>, transform_indices = @transform_3, window_bounds = array<i64: 3, 32, 32>}, {pipeline_mode = #tpu.pipeline_mode<synchronous>, transform_indices = @transform_4, window_bounds = array<i64: 32, 1>}, {transform_indices = @transform_5, window_bounds = array<i64: 1, 32, 128>}]} {
    %c128_i32 = arith.constant 128 : i32
    %0 = arith.muli %arg1, %c128_i32 : i32
    %c0 = arith.constant 0 : index
    %c0_0 = arith.constant 0 : index
    %c0_1 = arith.constant 0 : index
    %c0_2 = arith.constant 0 : index
    %1 = vector.load %arg2[%c0, %c0_0, %c0_1, %c0_2] : memref<1x1x2x130xf32, #tpu.memory_space<vmem>>, vector<1x1x2x130xf32>
    %2 = vector.shape_cast %1 : vector<1x1x2x130xf32> to vector<2x130xf32>
    %3 = vector.extract_strided_slice %2 {offsets = [0, 0], sizes = [1, 130], strides = [1, 1]} : vector<2x130xf32> to vector<1x130xf32>
    %4 = vector.extract_strided_slice %2 {offsets = [1, 0], sizes = [1, 130], strides = [1, 1]} : vector<2x130xf32> to vector<1x130xf32>
    %c0_3 = arith.constant 0 : index
    %c0_4 = arith.constant 0 : index
    %5 = vector.load %arg3[%c0_3, %c0_4] : memref<32x3xf32, #tpu.memory_space<vmem>>, vector<32x1xf32>
    %c0_5 = arith.constant 0 : index
    %c1 = arith.constant 1 : index
    %6 = vector.load %arg3[%c0_5, %c1] : memref<32x3xf32, #tpu.memory_space<vmem>>, vector<32x1xf32>
    %c0_6 = arith.constant 0 : index
    %c2 = arith.constant 2 : index
    %7 = vector.load %arg3[%c0_6, %c2] : memref<32x3xf32, #tpu.memory_space<vmem>>, vector<32x1xf32>
    %c0_7 = arith.constant 0 : index
    %c0_8 = arith.constant 0 : index
    %8 = vector.load %arg4[%c0_7, %c0_8] : memref<32x1xf32, #tpu.memory_space<vmem>>, vector<32x1xf32>
    %9 = vector.extract_strided_slice %4 {offsets = [0, 0], sizes = [1, 129], strides = [1, 1]} : vector<1x130xf32> to vector<1x129xf32>
    %10 = vector.broadcast %5 : vector<32x1xf32> to vector<32x129xf32>
    %11 = vector.broadcast %9 : vector<1x129xf32> to vector<32x129xf32>
    %12 = arith.mulf %10, %11 : vector<32x129xf32>
    %13 = vector.extract_strided_slice %3 {offsets = [0, 1], sizes = [1, 129], strides = [1, 1]} : vector<1x130xf32> to vector<1x129xf32>
    %14 = vector.broadcast %6 : vector<32x1xf32> to vector<32x129xf32>
    %15 = vector.broadcast %13 : vector<1x129xf32> to vector<32x129xf32>
    %16 = arith.mulf %14, %15 : vector<32x129xf32>
    %17 = arith.addf %12, %16 : vector<32x129xf32>
    %18 = vector.extract_strided_slice %4 {offsets = [0, 1], sizes = [1, 129], strides = [1, 1]} : vector<1x130xf32> to vector<1x129xf32>
    %19 = vector.broadcast %7 : vector<32x1xf32> to vector<32x129xf32>
    %20 = vector.broadcast %18 : vector<1x129xf32> to vector<32x129xf32>
    %21 = arith.mulf %19, %20 : vector<32x129xf32>
    %22 = arith.addf %17, %21 : vector<32x129xf32>
    %23 = vector.broadcast %8 : vector<32x1xf32> to vector<32x129xf32>
    %24 = arith.addf %22, %23 : vector<32x129xf32>
    %cst = arith.constant 0.000000e+00 : f32
    %25 = vector.broadcast %cst : f32 to vector<32x129xf32>
    %26 = arith.maximumf %24, %25 : vector<32x129xf32>
    %27 = vector.extract_strided_slice %3 {offsets = [0, 0], sizes = [1, 129], strides = [1, 1]} : vector<1x130xf32> to vector<1x129xf32>
    %28 = vector.broadcast %5 : vector<32x1xf32> to vector<32x129xf32>
    %29 = vector.broadcast %27 : vector<1x129xf32> to vector<32x129xf32>
    %30 = arith.mulf %28, %29 : vector<32x129xf32>
    %31 = vector.extract_strided_slice %4 {offsets = [0, 0], sizes = [1, 129], strides = [1, 1]} : vector<1x130xf32> to vector<1x129xf32>
    %32 = vector.broadcast %6 : vector<32x1xf32> to vector<32x129xf32>
    %33 = vector.broadcast %31 : vector<1x129xf32> to vector<32x129xf32>
    %34 = arith.mulf %32, %33 : vector<32x129xf32>
    %35 = arith.addf %30, %34 : vector<32x129xf32>
    %36 = vector.extract_strided_slice %3 {offsets = [0, 1], sizes = [1, 129], strides = [1, 1]} : vector<1x130xf32> to vector<1x129xf32>
    %37 = vector.broadcast %7 : vector<32x1xf32> to vector<32x129xf32>
    %38 = vector.broadcast %36 : vector<1x129xf32> to vector<32x129xf32>
    %39 = arith.mulf %37, %38 : vector<32x129xf32>
    %40 = arith.addf %35, %39 : vector<32x129xf32>
    %41 = vector.broadcast %8 : vector<32x1xf32> to vector<32x129xf32>
    %42 = arith.addf %40, %41 : vector<32x129xf32>
    %cst_9 = arith.constant 0.000000e+00 : f32
    %43 = vector.broadcast %cst_9 : f32 to vector<32x129xf32>
    %44 = arith.maximumf %42, %43 : vector<32x129xf32>
    %45 = tpu.iota {dimensions = array<i32: 1>} : vector<1x129xi32>
    %46 = vector.broadcast %0 : i32 to vector<1x129xi32>
    %47 = arith.addi %46, %45 : vector<1x129xi32>
    %c1_i32 = arith.constant 1 : i32
    %48 = vector.broadcast %c1_i32 : i32 to vector<1x129xi32>
    %49 = arith.subi %47, %48 : vector<1x129xi32>
    %c160_i32 = arith.constant 160 : i32
    %50 = vector.broadcast %c160_i32 : i32 to vector<1x129xi32>
    %51 = arith.cmpi slt, %47, %50 : vector<1x129xi32>
    %cst_10 = arith.constant 0.000000e+00 : f32
    %52 = vector.shape_cast %51 : vector<1x129xi1> to vector<1x129xi1>
    %53 = vector.broadcast %52 : vector<1x129xi1> to vector<32x129xi1>
    %54 = vector.broadcast %cst_10 : f32 to vector<32x129xf32>
    %55 = arith.select %53, %26, %54 : vector<32x129xi1>, vector<32x129xf32>
    %c0_11 = arith.constant 0 : index
    %c0_12 = arith.constant 0 : index
    %56 = vector.load %arg8[%c0_11, %c0_12] : memref<32x129xf32, #tpu.memory_space<vmem>>, vector<32x129xf32>
    tpu.vector_store %arg8[%c0_11, %c0_12], %55 {strides = array<i32>} : memref<32x129xf32, #tpu.memory_space<vmem>>, vector<32x129xf32>,
    %c0_i32 = arith.constant 0 : i32
    %57 = vector.broadcast %c0_i32 : i32 to vector<1x129xi32>
    %58 = arith.cmpi sge, %49, %57 : vector<1x129xi32>
    %c160_i32_13 = arith.constant 160 : i32
    %59 = vector.broadcast %c160_i32_13 : i32 to vector<1x129xi32>
    %60 = arith.cmpi slt, %49, %59 : vector<1x129xi32>
    %61 = arith.andi %58, %60 : vector<1x129xi1>
    %cst_14 = arith.constant 0.000000e+00 : f32
    %62 = vector.shape_cast %61 : vector<1x129xi1> to vector<1x129xi1>
    %63 = vector.broadcast %62 : vector<1x129xi1> to vector<32x129xi1>
    %64 = vector.broadcast %cst_14 : f32 to vector<32x129xf32>
    %65 = arith.select %63, %44, %64 : vector<32x129xi1>, vector<32x129xf32>
    %c0_15 = arith.constant 0 : index
    %c0_16 = arith.constant 0 : index
    %66 = vector.load %arg9[%c0_15, %c0_16] : memref<32x129xf32, #tpu.memory_space<vmem>>, vector<32x129xf32>
    tpu.vector_store %arg9[%c0_15, %c0_16], %65 {strides = array<i32>} : memref<32x129xf32, #tpu.memory_space<vmem>>, vector<32x129xf32>,
    %c0_17 = arith.constant 0 : index
    %c0_18 = arith.constant 0 : index
    %c0_19 = arith.constant 0 : index
    %67 = vector.load %arg5[%c0_17, %c0_18, %c0_19] : memref<3x32x32xf32, #tpu.memory_space<vmem>>, vector<1x32x32xf32>
    %68 = vector.shape_cast %67 : vector<1x32x32xf32> to vector<32x32xf32>
    %c1_20 = arith.constant 1 : index
    %c0_21 = arith.constant 0 : index
    %c0_22 = arith.constant 0 : index
    %69 = vector.load %arg5[%c1_20, %c0_21, %c0_22] : memref<3x32x32xf32, #tpu.memory_space<vmem>>, vector<1x32x32xf32>
    %70 = vector.shape_cast %69 : vector<1x32x32xf32> to vector<32x32xf32>
    %c2_23 = arith.constant 2 : index
    %c0_24 = arith.constant 0 : index
    %c0_25 = arith.constant 0 : index
    %71 = vector.load %arg5[%c2_23, %c0_24, %c0_25] : memref<3x32x32xf32, #tpu.memory_space<vmem>>, vector<1x32x32xf32>
    %72 = vector.shape_cast %71 : vector<1x32x32xf32> to vector<32x32xf32>
    %c0_26 = arith.constant 0 : index
    %c0_27 = arith.constant 0 : index
    %73 = vector.load %arg8[%c0_26, %c0_27] : memref<32x129xf32, #tpu.memory_space<vmem>>, vector<32x128xf32>
    %c0_28 = arith.constant 0 : index
    %c1_29 = arith.constant 1 : index
    %74 = vector.load %arg8[%c0_28, %c1_29] : memref<32x129xf32, #tpu.memory_space<vmem>>, vector<32x128xf32>
    %c0_30 = arith.constant 0 : index
    %c0_31 = arith.constant 0 : index
    %75 = vector.load %arg9[%c0_30, %c0_31] : memref<32x129xf32, #tpu.memory_space<vmem>>, vector<32x128xf32>
    %c0_32 = arith.constant 0 : index
    %c1_33 = arith.constant 1 : index
    %76 = vector.load %arg9[%c0_32, %c1_33] : memref<32x129xf32, #tpu.memory_space<vmem>>, vector<32x128xf32>
    %cst_34 = arith.constant dense<0.000000e+00> : vector<32x128xf32>
    %77 = tpu.matmul %68, %75, %cst_34 {dimension_numbers = #tpu.dot_dimension_numbers<[1], [0], [0], [1], [0, 0, 1, 1], [], []>} : vector<32x32xf32>, vector<32x128xf32>, vector<32x128xf32> -> vector<32x128xf32>
    %cst_35 = arith.constant dense<0.000000e+00> : vector<32x128xf32>
    %78 = tpu.matmul %70, %73, %cst_35 {dimension_numbers = #tpu.dot_dimension_numbers<[1], [0], [0], [1], [0, 0, 1, 1], [], []>} : vector<32x32xf32>, vector<32x128xf32>, vector<32x128xf32> -> vector<32x128xf32>
    %79 = arith.addf %77, %78 : vector<32x128xf32>
    %cst_36 = arith.constant dense<0.000000e+00> : vector<32x128xf32>
    %80 = tpu.matmul %72, %76, %cst_36 {dimension_numbers = #tpu.dot_dimension_numbers<[1], [0], [0], [1], [0, 0, 1, 1], [], []>} : vector<32x32xf32>, vector<32x128xf32>, vector<32x128xf32> -> vector<32x128xf32>
    %81 = arith.addf %79, %80 : vector<32x128xf32>
    %cst_37 = arith.constant dense<0.000000e+00> : vector<32x128xf32>
    %82 = tpu.matmul %68, %73, %cst_37 {dimension_numbers = #tpu.dot_dimension_numbers<[1], [0], [0], [1], [0, 0, 1, 1], [], []>} : vector<32x32xf32>, vector<32x128xf32>, vector<32x128xf32> -> vector<32x128xf32>
    %cst_38 = arith.constant dense<0.000000e+00> : vector<32x128xf32>
    %83 = tpu.matmul %70, %76, %cst_38 {dimension_numbers = #tpu.dot_dimension_numbers<[1], [0], [0], [1], [0, 0, 1, 1], [], []>} : vector<32x32xf32>, vector<32x128xf32>, vector<32x128xf32> -> vector<32x128xf32>
    %84 = arith.addf %82, %83 : vector<32x128xf32>
    %cst_39 = arith.constant dense<0.000000e+00> : vector<32x128xf32>
    %85 = tpu.matmul %72, %74, %cst_39 {dimension_numbers = #tpu.dot_dimension_numbers<[1], [0], [0], [1], [0, 0, 1, 1], [], []>} : vector<32x32xf32>, vector<32x128xf32>, vector<32x128xf32> -> vector<32x128xf32>
    %86 = arith.addf %84, %85 : vector<32x128xf32>
    %87 = arith.maximumf %81, %86 : vector<32x128xf32>
    %c0_40 = arith.constant 0 : index
    %c0_41 = arith.constant 0 : index
    %88 = vector.load %arg6[%c0_40, %c0_41] : memref<32x1xf32, #tpu.memory_space<vmem>>, vector<32x1xf32>
    %89 = vector.broadcast %88 : vector<32x1xf32> to vector<32x128xf32>
    %90 = arith.addf %87, %89 : vector<32x128xf32>
    %cst_42 = arith.constant 0.000000e+00 : f32
    %91 = vector.broadcast %cst_42 : f32 to vector<32x128xf32>
    %92 = arith.maximumf %90, %91 : vector<32x128xf32>
    %c0_43 = arith.constant 0 : index
    %c0_44 = arith.constant 0 : index
    %c0_45 = arith.constant 0 : index
    %93 = vector.load %arg7[%c0_43, %c0_44, %c0_45] : memref<1x32x128xf32, #tpu.memory_space<vmem>>, vector<1x32x128xf32>
    %94 = vector.shape_cast %93 : vector<1x32x128xf32> to vector<32x128xf32>
    %95 = vector.shape_cast %92 : vector<32x128xf32> to vector<1x32x128xf32>
    tpu.vector_store %arg7[%c0_43, %c0_44, %c0_45], %95 {strides = array<i32>} : memref<1x32x128xf32, #tpu.memory_space<vmem>>, vector<1x32x128xf32>,
    return
  }
  func.func @transform_0(%arg0: i32, %arg1: i32) -> (i32, i32, i32, i32) {
    %c0_i32 = arith.constant 0 : i32
    %c0_i32_0 = arith.constant 0 : i32
    %c0_i32_1 = arith.constant 0 : i32
    return %arg0, %arg1, %c0_i32, %c0_i32_0 : i32, i32, i32, i32
  }
  func.func @transform_1(%arg0: i32, %arg1: i32) -> (i32, i32) {
    %c0_i32 = arith.constant 0 : i32
    %c0_i32_0 = arith.constant 0 : i32
    %c0_i32_1 = arith.constant 0 : i32
    return %c0_i32, %c0_i32_0 : i32, i32
  }
  func.func @transform_2(%arg0: i32, %arg1: i32) -> (i32, i32) {
    %c0_i32 = arith.constant 0 : i32
    %c0_i32_0 = arith.constant 0 : i32
    %c0_i32_1 = arith.constant 0 : i32
    return %c0_i32, %c0_i32_0 : i32, i32
  }
  func.func @transform_3(%arg0: i32, %arg1: i32) -> (i32, i32, i32) {
    %c0_i32 = arith.constant 0 : i32
    %c0_i32_0 = arith.constant 0 : i32
    %c0_i32_1 = arith.constant 0 : i32
    %c0_i32_2 = arith.constant 0 : i32
    return %c0_i32, %c0_i32_0, %c0_i32_1 : i32, i32, i32
  }
  func.func @transform_4(%arg0: i32, %arg1: i32) -> (i32, i32) {
    %c0_i32 = arith.constant 0 : i32
    %c0_i32_0 = arith.constant 0 : i32
    %c0_i32_1 = arith.constant 0 : i32
    return %c0_i32, %c0_i32_0 : i32, i32
  }
  func.func @transform_5(%arg0: i32, %arg1: i32) -> (i32, i32, i32) {
    %c0_i32 = arith.constant 0 : i32
    %c0_i32_0 = arith.constant 0 : i32
    return %arg0, %c0_i32, %arg1 : i32, i32, i32
  }
}

</mosaic_0001>

<bundles_post_ra>
// kernel: tpu_custom_call.1
= control target key start
LH: loop header
LB: loop body
LE: loop exit
PB: predicated region body
PF: predicated region fallthrough
CT: control target
= control target key end

     0   :  { %10 = vsyncpa [#allocation5], 0  ;;  %s2549_s0 = inlined_call_operand.vmem [shape: f32[2,2,2,130], index: 0, kind: input, shape index: {}]   ;;  %s2550_s1 = inlined_call_operand.vmem [shape: f32[32,3], index: 1, kind: input, shape index: {}]   ;;  %s2551_s2 = inlined_call_operand.vmem [shape: f32[32,1], index: 2, kind: input, shape index: {}]   ;;  %s2552_s3 = inlined_call_operand.vmem [shape: f32[3,32,32], index: 3, kind: input, shape index: {}]   ;;  %s2553_s4 = inlined_call_operand.vmem [shape: f32[32,1], index: 4, kind: input, shape index: {}]   ;;  %s2554_s5 = inlined_call_operand.hbm [shape: f32[2,32,256], index: 5, kind: output, shape index: {}]  }
   0x1   :  { %12 = vsyncpa [#allocation5 + $0x1], 0  ;;  %s1975_s18 = smov 0   ;;  %s1977_s19 = smov 0  }
   0x2   :  { %s1979_s20 = smov 0   ;;  %s1981_s21 = smov 0  }
   0x3   :  { %s1983_s22 = smov 0   ;;  %s1985_s23 = smov 0  }
   0x4   :  { %s1987_s24 = smov 0   ;;  %s1989_s25 = smov 0  }
   0x5 LB: > { %s1436_s26 = sadd.s32 4294967295, %s1935_s25   ;;  %s1437_s27 = sadd.s32 4294967294, %s1935_s25   ;;  %s1935_s25 = sphi %s1989_s25, %s18_s25   ;;  %s1931_s24 = sphi %s1987_s24, %s2571_s24   ;;  %s1927_s23 = sphi %s1985_s23, %s2570_s23   ;;  %s1923_s22 = sphi %s1983_s22, %s2569_s22   ;;  %s1919_s21 = sphi %s1981_s21, %s2568_s21   ;;  %s1915_s20 = sphi %s1979_s20, %s2567_s20   ;;  %s1911_s19 = sphi %s1977_s19, %s2566_s19   ;;  %s1907_s18 = sphi %s1975_s18, %s2565_s18  }
   0x6   : > { %s27_s28 = sadd.s32 1, %s1927_s23  ;;  %s30_s29 = sadd.s32 1, %s1931_s24 }
   0x7   : > { %p28_p0 = scmp.ge.s32.totalorder %s27_s28, 2  ;;  %p161_p1 = scmp.ne.s32.totalorder %s1915_s20, %s1911_s19 }
   0x8   : > { %p162_p2 = scmp.eq.s32.totalorder %s1436_s26, 3  ;;  %p167_p5 = scmp.ne.s32.totalorder %s1911_s19, %s1907_s18 }
   0x9   : > { %s2573_s28 = smov (%p28_p0, %s27_s28), 0  ;;  %s2575_s29 = smov (!%p28_p0, %s30_s29), %s1931_s24 }
   0xa   : > { %s147_s30 = ssub.s32 %s1927_s23, %s2573_s28  ;;  %p2026_p3 = por %p162_p2, %p161_p1 }
   0xb   : > { %p32_p4 = scmp.ge.s32.totalorder %s2575_s29, 2  ;;  %p168_p6 = scmp.eq.s32.totalorder %s1437_s27, 3 }
   0xc   : > { %p1440_p7 = scmp.ge.s32.totalorder %s1935_s25, 1  ;;  %p210_p9 = scmp.lt.s32.totalorder %s1935_s25, 5 }
   0xd   : > { %s2577_s29 = smov (%p32_p4, %s2575_s29), 0  ;;  %p2035_p8 = por %p168_p6, %p167_p5 }
   0xe   : > { %s146_s8 = ssub.s32 %s1931_s24, %s2577_s29  ;;  %s151_s9 = sadd.s32 1, %s1915_s20 }
   0xf   : > { %s148_s10 = sor.u32 %s147_s30, %s146_s8  ;;  %p211_p10 = pnand %p1440_p7, %p210_p9 }
  0x10   : > { %p149_p11 = scmp.eq.s32.totalorder %s148_s10, 0  ;;  %v255_v0 = vld [vmem:[%s2550_s1 + $0x10] sm:$0xff] (!%p211_p10)  ;;  %v253_v1 = vld [vmem:[%s2550_s1] sm:$0xff] (!%p211_p10)  ;;  %v1937_v2 = vmov (!%p211_p10), 2   ;;  %v256_v3 = vld [vmem:[%s2550_s1 + $0x18] sm:$0xff] (!%p211_p10)  ;;  %v1938_v5 = vmov (!%p211_p10), 1   ;;  %v282_v11 = vlaneseq (!%p211_p10) }
  0x11   : > { %214 = sbr.rel (%p211_p10) target bundleno = 688 (0x2b0), region = 40  ;;  %1760 = vset.pattern.permute.xlu1 (!%p211_p10), %v1937_v2  ;;  %1759 = vset.pattern.permute.xlu0 (!%p211_p10), %v1937_v2  ;;  %v254_v4 = vld [vmem:[%s2550_s1 + $0x8] sm:$0xff] (!%p211_p10)  ;;  %v1939_v6 = vmov (!%p211_p10), 0   ;;  %v257_v7 = vld [vmem:[%s2551_s2] sm:$0xff] (!%p211_p10)  ;;  %v259_v8 = vld [vmem:[%s2551_s2 + $0x10] sm:$0xff] (!%p211_p10)  ;;  %p242_p12 = scmp.lt.s32.totalorder (!%p211_p10), %s1923_s22, 1 }
  0x12   : > { %s2044_s11 = scalar_select %p149_p11, %s1915_s20, %s151_s9  }
  0x13   : > { %404 = vperm.xlu1 (!%p211_p10), %1760, %v255_v0   ;;  %396 = vperm.xlu0 (!%p211_p10), %1759, %v253_v1   ;;  %v258_v9 = vld [vmem:[%s2551_s2 + $0x8] sm:$0xff] (!%p211_p10)  ;;  %v260_v10 = vld [vmem:[%s2551_s2 + $0x18] sm:$0xff] (!%p211_p10)  ;;  %p244_p13 = scmp.lt.s32.totalorder (!%p211_p10), %s1919_s21, 1  ;;  %v283_v12 = vshrl.u32 (!%p211_p10), %v282_v11, 7  ;;  %s1940_s13 = smov (!%p211_p10), 127   ;;  %vm678_vm0 = vcmask (!%p211_p10), 261120  }
  0x14   : > { %vm374_vm1 = vcmask (!%p211_p10), 1039360   ;;  %vm614_vm7 = vcmask (!%p211_p10), 7168   ;;  %s239_s10 = sand.u32 (!%p211_p10), 1, %s1911_s19  }
  0x15   : > { %v326_v13 = vsub.s32 (!%p211_p10), 0, %v283_v12  ;;  %v330_v14 = vsub.s32 (!%p211_p10), 2, %v283_v12  ;;  %v284_v22 = vsub.s32 (!%p211_p10), 1, %v283_v12  ;;  %v288_v25 = vsub.s32 (!%p211_p10), 3, %v283_v12  ;;  %s1441_s14 = sshll.u32 (!%p211_p10), %s239_s10, 5 }
  0x17   : > { %408 = vperm.xlu1 (!%p211_p10), %1760, %v256_v3   ;;  %400 = vperm.xlu0 (!%p211_p10), %1759, %v254_v4  }
  0x18   : > { %s243_s16 = scalar_select %p242_p12, %s1923_s22, 1 }
  0x19   : > { %s245_s17 = scalar_select %p244_p13, %s1919_s21, 1 }
  0x1a   : > { %s1443_s27 = sshll.u32 %s243_s16, 2  ;;  %s1445_s16 = sshll.u32 %s1919_s21, 7 }
  0x1b   : > { %1762 = vset.pattern.permute.xlu1 %v1938_v5  ;;  %1761 = vset.pattern.permute.xlu0 %v1938_v5  ;;  %s1442_s26 = sshll.u32 %s245_s17, 1 }
  0x1c   : > { %313 = vperm.xlu1 %1762, %v254_v4   ;;  %309 = vperm.xlu0 %1761, %v253_v1   ;;  %s248_s30 = sadd.s32 %s1443_s27, %s1442_s26 }
  0x1d   : > { %s1444_s8 = sshll.u32 %s248_s30, 1  ;;  %s2497_s30 = scalar_lea.sflag [#allocation5], %s239_s10 }
  0x1e   : > { %s250_s12 = scalar_lea.vmem %s2549_s0, %s1444_s8 }
  0x1f   : > { %v252_v15 = vld [vmem:[%s250_s12] sm:$0xf]  ;;  %s1481_s12 = sshll.u32 %s1923_s22, 3 }
  0x20   : > { %317 = vperm.xlu1 %1762, %v255_v0   ;;  %321 = vperm.xlu0 %1761, %v256_v3   ;;  %v331_v16 = vrot.slane %v252_v15, %v330_v14  ;;  %v327_v17 = vrot.slane %v252_v15, %v326_v13  ;;  %v285_v28 = vrot.slane %v252_v15, %v284_v22  ;;  %s1349_s15 = sadd.s32 %s1919_s21, %s1481_s12 }
  0x21   : > { %v289_v31 = vrot.slane %v252_v15, %v288_v25  ;;  %s1482_s22 = sshll.u32 %s1349_s15, 7 }
  0x22   : > { %v2078_v18 = vrot.slane %v331_v16, %v326_v13  ;;  %v2080_v19 = vrot.slane %v327_v17, %v326_v13  ;;  %v2098_v34 = vrot.slane %v285_v28, %v284_v22  ;;  %v594_v28 = vstv %s1445_s16  ;;  %s241_s16 = scalar_lea.vmem [#allocation4], %s1441_s14  ;;  %s2493_s27 = scalar_lea.hbm %s2554_s5, %s1482_s22 }
  0x23   : > { %v2100_v37 = vrot.slane %v289_v31, %v284_v22  ;;  %s1352_s17 = sshll.u32 %s241_s16, 4  ;;  %s2488_s17 = int_to_ptr.vmem [resolvable:$true] %s1352_s17 }
  0x24   : > { %1763 = vset.pattern.permute.xlu1 %v1939_v6  ;;  %1764 = vset.pattern.permute.xlu0 %v1939_v6  ;;  %s1841_s8 = scalar_lea.vmem %s2488_s17, 512 }
  0x25   : > { %263 = vperm.xlu1 %1763, %v253_v1   ;;  %268 = vperm.xlu0 %1764, %v254_v4   ;;  %p1842_p0 = scmp.ne.s32.totalorder %s2488_s17, %s1841_s8 }
  0x27   : > { %p1843_p1 = pnand %p1842_p0, %p2026_p3 }
  0x29   : > { %273 = vperm.xlu1 %1763, %v255_v0   ;;  %465 = vperm.xlu0 %1764, %v257_v7   ;;  %p1844_p2 = pneg %p1843_p1 }
  0x2d   : > { %278 = vperm.xlu1 %1763, %v256_v3   ;;  %475 = vperm.xlu0 %1764, %v259_v8  }
  0x31   : > { %470 = vperm.xlu1 %1763, %v258_v9  }
  0x35   : > { %480 = vperm.xlu1 %1763, %v260_v10  }
  0x92   : > { %v397_v20 = vpop.permute.xlu0 %396  ;;  %v2082_v21 = vpop.permute.xlu1 %404 }
  0x93   : > { %v524_v23 = vmul.f32 %v397_v20, %v2078_v18  ;;  %v523_v24 = vmul.f32 %v397_v20, %v2080_v19  ;;  %v528_v32 = vmul.f32 %v2082_v21, %v2078_v18  ;;  %v527_v33 = vmul.f32 %v2082_v21, %v2080_v19 }
  0x94   : > { %v412_v3 = vmul.f32 %v397_v20, %v2100_v37  ;;  %v411_v4 = vmul.f32 %v397_v20, %v2098_v34  ;;  %v416_v22 = vmul.f32 %v2082_v21, %v2100_v37 }
  0x95   : > { %541 = vrot.lane.b32.xlu1 %v524_v23, %s1940_s13  ;;  %539 = vrot.lane.b32.xlu0 %v523_v24, %s1940_s13  ;;  %v415_v23 = vmul.f32 %v2082_v21, %v2098_v34  ;;  %v1448_v24 = vld [vmem:[%s2552_s3 + $0x20] sm:$0xff]  ;;  %v592_v21 = vand.u32 127, %v282_v11 }
  0x96   : > { %v401_v26 = vpop.permute.xlu0 %400  ;;  %v2088_v27 = vpop.permute.xlu1 %408  ;;  %1541 = vmatprep.mubr.msk.f32.mxu0 %vm678_vm0, %v1448_v24  ;;  %1583 = vmatprep.mubr.msk.f32.mxu1 %vm678_vm0, %v1448_v24 }
  0x97   : > { %v526_v29 = vmul.f32 %v401_v26, %v2078_v18  ;;  %v525_v30 = vmul.f32 %v401_v26, %v2080_v19  ;;  %v530_v43 = vmul.f32 %v2088_v27, %v2078_v18  ;;  %v529_v44 = vmul.f32 %v2088_v27, %v2080_v19 }
  0x98   : > { %v414_v10 = vmul.f32 %v401_v26, %v2100_v37  ;;  %v413_v12 = vmul.f32 %v401_v26, %v2098_v34  ;;  %v593_v26 = vadd.s32 128, %v592_v21  ;;  %v2207_v31 = vadd.s32 %v594_v28, %v592_v21 }
  0x99   : > { %545 = vrot.lane.b32.xlu1 %v526_v29, %s1940_s13  ;;  %543 = vrot.lane.b32.xlu0 %v525_v30, %s1940_s13 }
  0x9a   : > { %v2203_v29 = vadd.s32 %v594_v28, %v593_v26  ;;  %v1446_v11 = vadd.s32 4294967295, %v2207_v31  ;;  %vm599_vm10 = vcmp.lt.s32.totalorder %v2207_v31, 160 }
  0x9b   : > { %v314_v35 = vpop.permute.xlu1 %313  ;;  %v310_v36 = vpop.permute.xlu0 %309  ;;  %vm2320_vm11 = vmpackc.low %vm599_vm10, %vm599_vm10 }
  0x9c   : > { %v509_v38 = vmul.f32 %v314_v35, %v2098_v34  ;;  %v507_v39 = vmul.f32 %v310_v36, %v2098_v34  ;;  %v508_v40 = vmul.f32 %v310_v36, %v2100_v37  ;;  %v510_v41 = vmul.f32 %v314_v35, %v2100_v37 }
  0x9d   : > { %549 = vrot.lane.b32.xlu1 %v528_v32, %s1940_s13  ;;  %547 = vrot.lane.b32.xlu0 %v527_v33, %s1940_s13  ;;  %v343_v48 = vmul.f32 %v2078_v18, %v310_v36  ;;  %v342_v49 = vmul.f32 %v2080_v19, %v310_v36  ;;  %v345_v54 = vmul.f32 %v2078_v18, %v314_v35  ;;  %v1447_v33 = vadd.s32 4294967295, %v2203_v29 }
  0x9e   : > { %v344_v55 = vmul.f32 %v2080_v19, %v314_v35  ;;  %vm622_vm4 = vcmp.ge.s32.totalorder %v1446_v11, 0  ;;  %vm624_vm5 = vcmp.lt.s32.totalorder %v1446_v11, 160  ;;  %vm600_vm9 = vcmp.lt.s32.totalorder %v2203_v29, 160  ;;  %v2366_v29 = vld [vmem:[%s2552_s3 + $0x28] sm:$0xff] }
  0x9f   : > { %v318_v42 = vpop.permute.xlu1 %317  ;;  %v322_v45 = vpop.permute.xlu0 %321  ;;  %vm623_vm2 = vcmp.ge.s32.totalorder %v1447_v33, 0  ;;  %vm625_vm3 = vcmp.lt.s32.totalorder %v1447_v33, 160  ;;  %vm2223_vm8 = vmand %vm622_vm4, %vm624_vm5 }
  0xa0   : > { %v511_v46 = vmul.f32 %v318_v42, %v2098_v34  ;;  %v513_v47 = vmul.f32 %v322_v45, %v2098_v34  ;;  %v512_v50 = vmul.f32 %v318_v42, %v2100_v37  ;;  %v514_v51 = vmul.f32 %v322_v45, %v2100_v37  ;;  %vm2216_vm6 = vmand %vm623_vm2, %vm625_vm3 }
  0xa1   : > { %553 = vrot.lane.b32.xlu1 %v530_v43, %s1940_s13  ;;  %551 = vrot.lane.b32.xlu0 %v529_v44, %s1940_s13  ;;  %v347_v15 = vmul.f32 %v2078_v18, %v318_v42  ;;  %v346_v16 = vmul.f32 %v2080_v19, %v318_v42  ;;  %v349_v17 = vmul.f32 %v2078_v18, %v322_v45  ;;  %vm2371_vm12 = vmpackc.low %vm2223_vm8, %vm2223_vm8 }
  0xa2   : > { %v348_v20 = vmul.f32 %v2080_v19, %v322_v45 }
  0xa4   : > { %v2120_v52 = vpop.permute.xlu1 %263  ;;  %v2122_v53 = vpop.permute.xlu0 %268 }
  0xa5   : > { %v499_v56 = vmul.f32 %v2080_v19, %v2120_v52  ;;  %360 = vrot.lane.b32.xlu1 %v343_v48, %s1940_s13  ;;  %358 = vrot.lane.b32.xlu0 %v342_v49, %s1940_s13  ;;  %v501_v57 = vmul.f32 %v2080_v19, %v2122_v53  ;;  %v500_v58 = vmul.f32 %v2078_v18, %v2120_v52 }
  0xa6   : > { %v502_v59 = vmul.f32 %v2078_v18, %v2122_v53 }
  0xa7   : > { %v516_v60 = vadd.f32 %v508_v40, %v500_v58  ;;  %v2136_v61 = vadd.f32 %v507_v39, %v499_v56  ;;  %v2138_v62 = vadd.f32 %v509_v38, %v501_v57 }
  0xa8   : > { %v2140_v63 = vpop.permute.xlu1 %273  ;;  %v2142_v0 = vadd.f32 %v510_v41, %v502_v59  ;;  %v2199_v25 = vpop.permute.xlu0 %465 }
  0xa9   : > { %v503_v1 = vmul.f32 %v2080_v19, %v2140_v63  ;;  %364 = vrot.lane.b32.xlu1 %v345_v54, %s1940_s13  ;;  %362 = vrot.lane.b32.xlu0 %v344_v55, %s1940_s13  ;;  %v504_v2 = vmul.f32 %v2078_v18, %v2140_v63 }
  0xab   : > { %v2152_v5 = vadd.f32 %v512_v50, %v504_v2  ;;  %v2154_v6 = vadd.f32 %v511_v46, %v503_v1 }
  0xac   : > { %v2156_v7 = vpop.permute.xlu1 %278  ;;  %v2205_v30 = vpop.permute.xlu0 %475 }
  0xad   : > { %v505_v8 = vmul.f32 %v2080_v19, %v2156_v7  ;;  %429 = vrot.lane.b32.xlu1 %v412_v3, %s1940_s13  ;;  %427 = vrot.lane.b32.xlu0 %v411_v4, %s1940_s13  ;;  %v506_v9 = vmul.f32 %v2078_v18, %v2156_v7  ;;  %v418_v18 = vmul.f32 %v2088_v27, %v2100_v37 }
  0xae   : > { %v417_v19 = vmul.f32 %v2088_v27, %v2098_v34 }
  0xaf   : > { %v2166_v13 = vadd.f32 %v514_v51, %v506_v9  ;;  %v2168_v14 = vadd.f32 %v513_v47, %v505_v8 }
  0xb0   : > { %v2201_v27 = vpop.permute.xlu1 %470 }
  0xb1   : > { %433 = vrot.lane.b32.xlu1 %v414_v10, %s1940_s13  ;;  %431 = vrot.lane.b32.xlu0 %v413_v12, %s1940_s13 }
  0xb4   : > { %v2209_v32 = vpop.permute.xlu1 %480 }
  0xb5   : > { %368 = vrot.lane.b32.xlu1 %v347_v15, %s1940_s13  ;;  %366 = vrot.lane.b32.xlu0 %v346_v16, %s1940_s13 }
  0xb9   : > { %372 = vrot.lane.b32.xlu1 %v349_v17, %s1940_s13  ;;  %370 = vrot.lane.b32.xlu0 %v348_v20, %s1940_s13 }
  0xbd   : > { %437 = vrot.lane.b32.xlu1 %v416_v22, %s1940_s13  ;;  %435 = vrot.lane.b32.xlu0 %v415_v23, %s1940_s13 }
  0xc1   : > { %441 = vrot.lane.b32.xlu1 %v418_v18, %s1940_s13  ;;  %439 = vrot.lane.b32.xlu0 %v417_v19, %s1940_s13 }
 0x107   : > { %v542_v35 = vpop.permute.xlu1 %541  ;;  %v540_v36 = vpop.permute.xlu0 %539 }
 0x108   : > { %v568_v38 = vadd.f32 %v542_v35, %v516_v60  ;;  %v555_v39 = vsel %vm374_vm1, %v540_v36, %v542_v35 }
 0x109   : > { %v567_v40 = vadd.f32 %v555_v39, %v2136_v61 }
 0x10a   : > { %v576_v41 = vadd.f32 %v568_v38, %v2199_v25  ;;  %v301_v38 = vmul.f32 %v2100_v37, %v2120_v52 }
 0x10b   : > { %v2221_v43 = vadd.f32 %v567_v40, %v2199_v25  ;;  %v546_v44 = vpop.permute.xlu1 %545  ;;  %v544_v45 = vpop.permute.xlu0 %543  ;;  %v300_v40 = vmul.f32 %v2098_v34, %v2120_v52 }
 0x10c   : > { %v584_v46 = vmax.f32 %v576_v41, 0.0  ;;  %v570_v48 = vadd.f32 %v546_v44, %v2142_v0  ;;  %v556_v49 = vsel %vm374_vm1, %v544_v45, %v546_v44 }
 0x10d   : > { %v583_v50 = vmax.f32 %v2221_v43, 0.0  ;;  %v569_v51 = vadd.f32 %v556_v49, %v2138_v62  ;;  %v303_v49 = vmul.f32 %v2100_v37, %v2122_v53 }
 0x10e   : > { %v633_v54 = vsel %vm2216_vm6, %v584_v46, 0.0  ;;  %v578_v55 = vadd.f32 %v570_v48, %v2201_v27 }
 0x10f   : > { %641 = vst.msk [vmem:[#allocation3 + $0x8] sm:$0xff] %vm614_vm7, %v633_v54  ;;  %v632_v56 = vsel %vm2223_vm8, %v583_v50, 0.0  ;;  %v2240_v57 = vadd.f32 %v569_v51, %v2201_v27  ;;  %v550_v58 = vpop.permute.xlu1 %549  ;;  %v548_v59 = vpop.permute.xlu0 %547 }
 0x110   : > { %v586_v60 = vmax.f32 %v578_v55, 0.0  ;;  %v572_v61 = vadd.f32 %v550_v58, %v2152_v5  ;;  %v557_v62 = vsel %vm374_vm1, %v548_v59, %v550_v58 }
 0x111   : > { %v585_v0 = vmax.f32 %v2240_v57, 0.0  ;;  %v571_v1 = vadd.f32 %v557_v62, %v2154_v6 }
 0x112   : > { %v635_v2 = vsel %vm2216_vm6, %v586_v60, 0.0  ;;  %v580_v3 = vadd.f32 %v572_v61, %v2205_v30 }
 0x113   : > { %643 = vst.msk [vmem:[#allocation3 + $0x18] sm:$0xff] %vm614_vm7, %v635_v2  ;;  %v634_v4 = vsel %vm2223_vm8, %v585_v0, 0.0  ;;  %v2255_v5 = vadd.f32 %v571_v1, %v2205_v30  ;;  %v554_v8 = vpop.permute.xlu1 %553  ;;  %v552_v9 = vpop.permute.xlu0 %551 }
 0x114   : > { %v588_v10 = vmax.f32 %v580_v3, 0.0  ;;  %v574_v6 = vadd.f32 %v554_v8, %v2166_v13  ;;  %v558_v12 = vsel %vm374_vm1, %v552_v9, %v554_v8 }
 0x115   : > { %v587_v15 = vmax.f32 %v2255_v5, 0.0  ;;  %v573_v16 = vadd.f32 %v558_v12, %v2168_v14  ;;  %v1303_v5 = vld [vmem:[%s2553_s4 + $0x10] sm:$0xff] }
 0x116   : > { %v637_v17 = vsel %vm2216_vm6, %v588_v10, 0.0  ;;  %v582_v20 = vadd.f32 %v574_v6, %v2209_v32  ;;  %v674_v22 = vld [vmem:[#allocation3 + $0x8] sm:$0xff] }
 0x117   : > { %645 = vst.msk [vmem:[#allocation3 + $0x28] sm:$0xff] %vm614_vm7, %v637_v17  ;;  %v636_v23 = vsel %vm2223_vm8, %v587_v15, 0.0  ;;  %v2270_v13 = vadd.f32 %v573_v16, %v2209_v32  ;;  %v361_v18 = vpop.permute.xlu1 %360  ;;  %v359_v19 = vpop.permute.xlu0 %358  ;;  %v1765_v24 = vpack.i.bf16 %v674_v22, %v632_v56  ;;  %v302_v56 = vmul.f32 %v2098_v34, %v2122_v53 }
 0x118   : > { %v590_v14 = vmax.f32 %v582_v20, 0.0  ;;  %v375_v39 = vsel %vm374_vm1, %v359_v19, %v361_v18  ;;  %v388_v41 = vadd.f32 %v361_v18, %v301_v38 }
 0x119   : > { %v589_v21 = vmax.f32 %v2270_v13, 0.0  ;;  %1766 = vrot.lane.b32.xlu0 %v1765_v24, %s1940_s13  ;;  %v387_v44 = vadd.f32 %v375_v39, %v300_v40  ;;  %v650_v13 = vld [vmem:[%s2552_s3 + $0x10] sm:$0xff] }
 0x11a   : > { %v639_v26 = vsel %vm2216_vm6, %v590_v14, 0.0  ;;  %v675_v28 = vld [vmem:[#allocation3 + $0x18] sm:$0xff] }
 0x11b   : > { %647 = vst.msk [vmem:[#allocation3 + $0x38] sm:$0xff] %vm614_vm7, %v639_v26  ;;  %v638_v33 = vsel %vm2223_vm8, %v589_v21, 0.0  ;;  %v365_v11 = vpop.permute.xlu1 %364  ;;  %v363_v35 = vpop.permute.xlu0 %362  ;;  %v1770_v36 = vpack.i.bf16 %v675_v28, %v634_v4  ;;  %v305_v26 = vmul.f32 %v2100_v37, %v2140_v63  ;;  %v1824_v57 = vpack.c.bf16 %v589_v21, %v587_v15  ;;  %v649_v15 = vld [vmem:[%s2552_s3 + $0x8] sm:$0xff]  ;;  %v1304_v21 = vld [vmem:[%s2553_s4 + $0x18] sm:$0xff] }
 0x11c   : > { %v376_v51 = vsel %vm374_vm1, %v363_v35, %v365_v11  ;;  %v390_v58 = vadd.f32 %v365_v11, %v303_v49 }
 0x11d   : > { %1771 = vrot.lane.b32.xlu1 %v1770_v36, %s1940_s13  ;;  %v389_v61 = vadd.f32 %v376_v51, %v302_v56 }
 0x11e   : > { %v676_v42 = vld [vmem:[#allocation3 + $0x28] sm:$0xff] }
 0x11f   : > { %v430_v45 = vpop.permute.xlu1 %429  ;;  %v428_v46 = vpop.permute.xlu0 %427  ;;  %v1775_v48 = vpack.i.bf16 %v676_v42, %v636_v23 }
 0x120   : > { %v456_v54 = vadd.f32 %v430_v45, %v388_v41  ;;  %v443_v55 = vsel %vm374_vm1, %v428_v46, %v430_v45  ;;  %v306_v46 = vmul.f32 %v2098_v34, %v2156_v7 }
 0x121   : > { %v455_v52 = vadd.f32 %v443_v55, %v387_v44  ;;  %1776 = vrot.lane.b32.xlu0 %v1775_v48, %s1940_s13 }
 0x122   : > { %v484_v59 = vadd.f32 %v2199_v25, %v456_v54  ;;  %v677_v60 = vld [vmem:[#allocation3 + $0x38] sm:$0xff] }
 0x123   : > { %v483_v62 = vadd.f32 %v2199_v25, %v455_v52  ;;  %v434_v1 = vpop.permute.xlu1 %433  ;;  %v432_v2 = vpop.permute.xlu0 %431  ;;  %v1780_v3 = vpack.i.bf16 %v677_v60, %v638_v33 }
 0x124   : > { %v492_v4 = vmax.f32 %v484_v59, 0.0  ;;  %v458_v8 = vadd.f32 %v434_v1, %v390_v58  ;;  %v444_v53 = vsel %vm374_vm1, %v432_v2, %v434_v1 }
 0x125   : > { %v491_v9 = vmax.f32 %v483_v62, 0.0  ;;  %v457_v10 = vadd.f32 %v444_v53, %v389_v61  ;;  %1781 = vrot.lane.b32.xlu1 %v1780_v3, %s1940_s13 }
 0x126   : > { %v606_v6 = vsel %vm600_vm9, %v492_v4, 0.0  ;;  %v486_v12 = vadd.f32 %v2201_v27, %v458_v8 }
 0x127   : > { %615 = vst.msk [vmem:[#allocation2 + $0x8] sm:$0xff] %vm614_vm7, %v606_v6  ;;  %v605_v25 = vsel %vm599_vm10, %v491_v9, 0.0  ;;  %v485_v16 = vadd.f32 %v2201_v27, %v457_v10  ;;  %v369_v17 = vpop.permute.xlu1 %368  ;;  %v367_v20 = vpop.permute.xlu0 %366  ;;  %v304_v27 = vmul.f32 %v2098_v34, %v2140_v63  ;;  %v307_v63 = vmul.f32 %v2100_v37, %v2156_v7 }
 0x128   : > { %v494_v22 = vmax.f32 %v486_v12, 0.0  ;;  %v377_v28 = vsel %vm374_vm1, %v367_v20, %v369_v17  ;;  %v392_v33 = vadd.f32 %v369_v17, %v305_v26  ;;  %v2384_v12 = vld [vmem:[%s2552_s3 + $0x30] sm:$0xff]  ;;  %v651_v17 = vld [vmem:[%s2552_s3 + $0x18] sm:$0xff]  ;;  %v1452_v20 = vld [vmem:[%s2552_s3 + $0x40] sm:$0xff] }
 0x129   : > { %v493_v23 = vmax.f32 %v485_v16, 0.0  ;;  %v391_v38 = vadd.f32 %v377_v28, %v304_v27  ;;  %v1302_v16 = vld [vmem:[%s2553_s4 + $0x8] sm:$0xff] }
 0x12a   : > { %v608_v18 = vsel %vm600_vm9, %v494_v22, 0.0 }
 0x12b   : > { %617 = vst.msk [vmem:[#allocation2 + $0x18] sm:$0xff] %vm614_vm7, %v608_v18  ;;  %v607_v19 = vsel %vm599_vm10, %v493_v23, 0.0  ;;  %v373_v24 = vpop.permute.xlu1 %372  ;;  %v371_v14 = vpop.permute.xlu0 %370  ;;  %v2324_v36 = vpack.c.bf16 %v493_v23, %v491_v9 }
 0x12c   : > { %v378_v42 = vsel %vm374_vm1, %v371_v14, %v373_v24  ;;  %v394_v49 = vadd.f32 %v373_v24, %v307_v63 }
 0x12d   : > { %1807 = vmatprep.subr.msk.bf16.mxu0 %vm2320_vm11, %v2324_v36  ;;  %v393_v55 = vadd.f32 %v378_v42, %v306_v46  ;;  %v1454_v46 = vld [vmem:[%s2552_s3 + $0x50] sm:$0xff] }
 0x12e   : > { %v666_v11 = vld [vmem:[#allocation2 + $0x8] sm:$0xff]  ;;  %1810 = vmatpush3.bf16.msk.msra.mxu0 %vm2320_vm11, %v2324_v36 }
 0x12f   : > { %v438_v39 = vpop.permute.xlu1 %437  ;;  %v436_v40 = vpop.permute.xlu0 %435  ;;  %v1785_v41 = vpack.i.bf16 %v666_v11, %v605_v25  ;;  %v1301_v25 = vld [vmem:[%s2553_s4] sm:$0xff] }
 0x130   : > { %v460_v44 = vadd.f32 %v438_v39, %v392_v33  ;;  %v445_v45 = vsel %vm374_vm1, %v436_v40, %v438_v39 }
 0x131   : > { %v459_v48 = vadd.f32 %v445_v45, %v391_v38  ;;  %1786 = vrot.lane.b32.xlu0 %v1785_v41, %s1940_s13  ;;  %v1453_v45 = vld [vmem:[%s2552_s3 + $0x48] sm:$0xff] }
 0x132   : > { %v488_v51 = vadd.f32 %v2205_v30, %v460_v44  ;;  %v667_v54 = vld [vmem:[#allocation2 + $0x18] sm:$0xff] }
 0x133   : > { %v487_v56 = vadd.f32 %v2205_v30, %v459_v48  ;;  %v442_v52 = vpop.permute.xlu1 %441  ;;  %v440_v37 = vpop.permute.xlu0 %439  ;;  %v1790_v58 = vpack.i.bf16 %v667_v54, %v607_v19  ;;  %v1455_v48 = vld [vmem:[%s2552_s3 + $0x58] sm:$0xff] }
 0x134   : > { %v496_v59 = vmax.f32 %v488_v51, 0.0  ;;  %v462_v60 = vadd.f32 %v442_v52, %v394_v49  ;;  %v446_v61 = vsel %vm374_vm1, %v440_v37, %v442_v52 }
 0x135   : > { %v495_v62 = vmax.f32 %v487_v56, 0.0  ;;  %v461_v1 = vadd.f32 %v446_v61, %v393_v55  ;;  %1791 = vrot.lane.b32.xlu1 %v1790_v58, %s1940_s13 }
 0x136   : > { %v610_v34 = vsel %vm600_vm9, %v496_v59, 0.0  ;;  %v490_v7 = vadd.f32 %v2209_v32, %v462_v60 }
 0x137   : > { %619 = vst.msk [vmem:[#allocation2 + $0x28] sm:$0xff] %vm614_vm7, %v610_v34  ;;  %v609_v30 = vsel %vm599_vm10, %v495_v62, 0.0  ;;  %v489_v2 = vadd.f32 %v2209_v32, %v461_v1  ;;  %v1818_v32 = vpack.c.bf16 %v585_v0, %v583_v50  ;;  %v1451_v50 = vld [vmem:[%s2552_s3 + $0x38] sm:$0xff]  ;;  %v648_v0 = vld [vmem:[%s2552_s3] sm:$0xff] }
 0x138   : > { %v498_v3 = vmax.f32 %v490_v7, 0.0 }
 0x139   : > { %v497_v4 = vmax.f32 %v489_v2, 0.0 }
 0x13a   : > { %v612_v8 = vsel %vm600_vm9, %v498_v3, 0.0 }
 0x13b   : > { %621 = vst.msk [vmem:[#allocation2 + $0x38] sm:$0xff] %vm614_vm7, %v612_v8  ;;  %v611_v53 = vsel %vm599_vm10, %v497_v4, 0.0  ;;  %v2355_v10 = vpack.c.bf16 %v497_v4, %v495_v62 }
 0x13d   : > { %1813 = vmatprep.subr.msk.bf16.mxu0 %vm2320_vm11, %v2355_v10 }
 0x13e   : > { %v668_v9 = vld [vmem:[#allocation2 + $0x28] sm:$0xff]  ;;  %1816 = vmatpush3.bf16.msk.msra.mxu0 %vm2320_vm11, %v2355_v10 }
 0x13f   : > { %v1795_v6 = vpack.i.bf16 %v668_v9, %v609_v30  ;;  %1819 = vmatprep.subr.msk.bf16.mxu0 %vm2371_vm12, %v1818_v32 }
 0x141   : > { %1796 = vrot.lane.b32.xlu0 %v1795_v6, %s1940_s13  ;;  %1542 = vmatmul.mubr.msk.f32.vlgmr.msra.gmra.mrb[0].mxu0 %vm678_vm0, %v2366_v29 }
 0x142   : > { %v669_v47 = vld [vmem:[#allocation2 + $0x38] sm:$0xff]  ;;  %1822 = vmatpush3.bf16.msk.msra.mxu0 %vm2371_vm12, %v1818_v32  ;;  %1544 = vmatprep.mubr.msk.f32.mxu0 %vm678_vm0, %v2384_v12 }
 0x143   : > { %v1800_v43 = vpack.i.bf16 %v669_v47, %v611_v53  ;;  %1825 = vmatprep.subr.msk.bf16.mxu0 %vm2371_vm12, %v1824_v57 }
 0x145   : > { %1801 = vrot.lane.b32.xlu1 %v1800_v43, %s1940_s13  ;;  %1307 = vperm.xlu0 %1764, %v1301_v25   ;;  %s1941_s13 = smov [#allocation4]  }
 0x146   : > { %1545 = vmatmul.mubr.msk.f32.gmra.mrb[2].mxu0 %vm678_vm0, %v1451_v50  ;;  %s1845_s9 = sshll.u32 %s1941_s13, 4  ;;  %s1846_s9 = int_to_ptr.vmem [resolvable:$false] %s1845_s9 }
 0x147   : > { %1828 = vmatpush3.bf16.msk.msra.mxu0 %vm2371_vm12, %v1824_v57  ;;  %1555 = vmatprep.mubr.msk.f32.mxu0 %vm678_vm0, %v648_v0  ;;  %s1847_s12 = scalar_lea.vmem %s1846_s9, 1024  ;;  %p1848_p4 = scmp.lt.s32.totalorder %s2488_s17, %s1846_s9 }
 0x148   : > { %p1849_p5 = scmp.lt.s32.totalorder %s1847_s12, %s1841_s8 }
 0x149   : > { %1312 = vperm.xlu1 %1763, %v1302_v16   ;;  %1317 = vperm.xlu0 %1764, %v1303_v5  }
 0x14a   : > { %1556 = vmatmul.mubr.msk.f32.vlgmr.msra.gmra.mrb[0].mxu0 %vm678_vm0, %v649_v15  ;;  %p1850_p6 = por %p1849_p5, %p1848_p4 }
 0x14b   : > { %1558 = vmatprep.mubr.msk.f32.mxu0 %vm678_vm0, %v650_v13 }
 0x14c   : > { %p1851_p7 = pnand %p1850_p6, %p1844_p2 }
 0x14d   : > { %1322 = vperm.xlu1 %1763, %v1304_v21  }
 0x14e   : > { %1559 = vmatmul.mubr.msk.f32.gmra.mrb[2].mxu0 %vm678_vm0, %v651_v17 }
 0x14f   : > { %1569 = vmatprep.mubr.msk.f32.mxu0 %vm678_vm0, %v1452_v20 }
 0x18b   : > { %v1767_v22 = vpop.permute.xlu0 %1766 }
 0x18c   : > { %v1769_v23 = vunpack.i.h.bf16 %v1767_v22  ;;  %v1768_v18 = vunpack.i.l.bf16 %v1767_v22 }
 0x18e   : > { %v897_v26 = vsel %vm374_vm1, %v1768_v18, %v1769_v23 }
 0x18f   : > { %v1772_v19 = vpop.permute.xlu1 %1771 }
 0x190   : > { %v1774_v24 = vunpack.i.h.bf16 %v1772_v19  ;;  %v1773_v14 = vunpack.i.l.bf16 %v1772_v19 }
 0x192   : > { %v898_v28 = vsel %vm374_vm1, %v1773_v14, %v1774_v24 }
 0x193   : > { %v1633_v27 = vpack.c.bf16 %v898_v28, %v897_v26  ;;  %v1777_v33 = vpop.permute.xlu0 %1776 }
 0x194   : > { %v1779_v11 = vunpack.i.h.bf16 %v1777_v33  ;;  %v1778_v38 = vunpack.i.l.bf16 %v1777_v33 }
 0x195   : > { %1634 = vmatprep.subr.bf16.mxu0 %v1633_v27  ;;  %1642 = vmatprep.subr.bf16.mxu1 %v1633_v27 }
 0x196   : > { %1636 = vmatpush3.bf16.msra.mxu0 %v1633_v27  ;;  %1644 = vmatpush3.bf16.msra.mxu1 %v1633_v27  ;;  %v899_v63 = vsel %vm374_vm1, %v1778_v38, %v1779_v11 }
 0x197   : > { %v1782_v39 = vpop.permute.xlu1 %1781 }
 0x198   : > { %v1784_v40 = vunpack.i.h.bf16 %v1782_v39  ;;  %v1783_v41 = vunpack.i.l.bf16 %v1782_v39 }
 0x19a   : > { %v900_v42 = vsel %vm374_vm1, %v1783_v41, %v1784_v40 }
 0x19b   : > { %v1637_v44 = vpack.c.bf16 %v900_v42, %v899_v63 }
 0x19d   : > { %1638 = vmatprep.subr.bf16.mxu0 %v1637_v44  ;;  %1646 = vmatprep.subr.bf16.mxu1 %v1637_v44 }
 0x19e   : > { %1640 = vmatpush3.bf16.msra.mxu0 %v1637_v44  ;;  %1648 = vmatpush3.bf16.msra.mxu1 %v1637_v44 }
 0x19f   : > { %1831 = vmatprep.subr.msk.bf16.mxu1 %vm2320_vm11, %v2324_v36 }
 0x1a1   : > { %1584 = vmatmul.mubr.msk.f32.vlgmr.msra.gmra.mrb[0].mxu1 %vm678_vm0, %v2366_v29  ;;  %1570 = vmatmul.mubr.msk.f32.vlgmr.msra.gmra.mrb[0].mxu0 %vm678_vm0, %v1453_v45 }
 0x1a2   : > { %1834 = vmatpush3.bf16.msk.msra.mxu1 %vm2320_vm11, %v2324_v36  ;;  %1586 = vmatprep.mubr.msk.f32.mxu1 %vm678_vm0, %v2384_v12 }
 0x1a3   : > { %v1787_v49 = vpop.permute.xlu0 %1786  ;;  %1837 = vmatprep.subr.msk.bf16.mxu1 %vm2320_vm11, %v2355_v10  ;;  %1572 = vmatprep.mubr.msk.f32.mxu0 %vm678_vm0, %v1454_v46 }
 0x1a4   : > { %v1789_v51 = vunpack.i.h.bf16 %v1787_v49  ;;  %v1788_v36 = vunpack.i.l.bf16 %v1787_v49 }
 0x1a5   : > { %1587 = vmatmul.mubr.msk.f32.gmra.mrb[2].mxu1 %vm678_vm0, %v1451_v50  ;;  %1573 = vmatmul.mubr.msk.f32.gmra.mrb[2].mxu0 %vm678_vm0, %v1455_v48 }
 0x1a6   : > { %1840 = vmatpush3.bf16.msk.msra.mxu1 %vm2320_vm11, %v2355_v10  ;;  %1597 = vmatprep.mubr.msk.f32.mxu1 %vm678_vm0, %v648_v0  ;;  %v1200_v52 = vsel %vm374_vm1, %v1788_v36, %v1789_v51 }
 0x1a7   : > { %v1792_v54 = vpop.permute.xlu1 %1791 }
 0x1a8   : > { %v1794_v55 = vunpack.i.h.bf16 %v1792_v54  ;;  %v1793_v56 = vunpack.i.l.bf16 %v1792_v54 }
 0x1a9   : > { %1598 = vmatmul.mubr.msk.f32.vlgmr.msra.gmra.mrb[0].mxu1 %vm678_vm0, %v649_v15 }
 0x1aa   : > { %v1201_v37 = vsel %vm374_vm1, %v1793_v56, %v1794_v55  ;;  %1600 = vmatprep.mubr.msk.f32.mxu1 %vm678_vm0, %v650_v13 }
 0x1ab   : > { %v1657_v58 = vpack.c.bf16 %v1201_v37, %v1200_v52 }
 0x1ad   : > { %1658 = vmatprep.subr.bf16.mxu1 %v1657_v58  ;;  %1601 = vmatmul.mubr.msk.f32.gmra.mrb[2].mxu1 %vm678_vm0, %v651_v17 }
 0x1ae   : > { %1660 = vmatpush3.bf16.msra.mxu1 %v1657_v58  ;;  %1611 = vmatprep.mubr.msk.f32.mxu1 %vm678_vm0, %v1452_v20 }
 0x1b3   : > { %v1797_v35 = vpop.permute.xlu0 %1796 }
 0x1b4   : > { %v1799_v59 = vunpack.i.h.bf16 %v1797_v35  ;;  %v1798_v60 = vunpack.i.l.bf16 %v1797_v35 }
 0x1b6   : > { %v1202_v34 = vsel %vm374_vm1, %v1798_v60, %v1799_v59 }
 0x1b7   : > { %v1802_v61 = vpop.permute.xlu1 %1801 }
 0x1b8   : > { %v1804_v62 = vunpack.i.h.bf16 %v1802_v61  ;;  %v1803_v1 = vunpack.i.l.bf16 %v1802_v61 }
 0x1ba   : > { %v1203_v7 = vsel %vm374_vm1, %v1803_v1, %v1804_v62 }
 0x1bb   : > { %v1661_v30 = vpack.c.bf16 %v1203_v7, %v1202_v34 }
 0x1bd   : > { %1662 = vmatprep.subr.bf16.mxu1 %v1661_v30 }
 0x1be   : > { %1664 = vmatpush3.bf16.msra.mxu1 %v1661_v30 }
 0x1c1   : > { %1612 = vmatmul.mubr.msk.f32.vlgmr.msra.gmra.mrb[0].mxu1 %vm678_vm0, %v1453_v45 }
 0x1c2   : > { %1614 = vmatprep.mubr.msk.f32.mxu1 %vm678_vm0, %v1454_v46 }
 0x1c4   : > { %v1308_v10 = vpop.permute.xlu0 %1307 }
 0x1c5   : > { %1615 = vmatmul.mubr.msk.f32.gmra.mrb[2].mxu1 %vm678_vm0, %v1455_v48 }
 0x1c8   : > { %v1313_v53 = vpop.permute.xlu1 %1312  ;;  %v1318_v5 = vpop.permute.xlu0 %1317 }
 0x1cc   : > { %v1323_v57 = vpop.permute.xlu1 %1322 }
 0x274   : > { %v1571_v2 = vpop.f32.mrb[0].mxu0 }
 0x275   : > { %v983_v3 = vpop.f32.mrb[1].mxu0 }
 0x278   : > { %v1574_v4 = vpop.f32.mrb[2].mxu0 }
 0x279   : > { %v993_v8 = vpop.f32.mrb[3].mxu0 }
 0x294   : > { %v1613_v9 = vpop.f32.mrb[0].mxu1 }
 0x295   : > { %v1298_v6 = vmax.f32 %v1571_v2, %v1613_v9  ;;  %v1274_v29 = vpop.f32.mrb[1].mxu1 }
 0x296   : > { %v1297_v31 = vmax.f32 %v983_v3, %v1274_v29 }
 0x297   : > { %v1326_v32 = vadd.f32 %v1313_v53, %v1298_v6 }
 0x298   : > { %v1325_v12 = vadd.f32 %v1308_v10, %v1297_v31  ;;  %v1616_v47 = vpop.f32.mrb[2].mxu1 }
 0x299   : > { %v1330_v25 = vmax.f32 %v1326_v32, 0.0  ;;  %v1300_v43 = vmax.f32 %v1574_v4, %v1616_v47  ;;  %v1284_v50 = vpop.f32.mrb[3].mxu1 }
 0x29a   : > { %v1329_v0 = vmax.f32 %v1325_v12, 0.0  ;;  %v1299_v16 = vmax.f32 %v993_v8, %v1284_v50 }
 0x29b   : > { %1334 = vst [vmem:[%s241_s16 + $0x8] sm:$0xff] %v1330_v25  ;;  %v1328_v15 = vadd.f32 %v1323_v57, %v1300_v43 }
 0x29c   : > { %1333 = vst [vmem:[%s241_s16] sm:$0xff] %v1329_v0  ;;  %v1327_v13 = vadd.f32 %v1318_v5, %v1299_v16 }
 0x29d   : > { %v1332_v21 = vmax.f32 %v1328_v15, 0.0 }
 0x29e   : > { %v1331_v17 = vmax.f32 %v1327_v13, 0.0 }
 0x29f   : > { %1336 = vst [vmem:[%s241_s16 + $0x18] sm:$0xff] %v1332_v21 }
 0x2a0   : > { %1335 = vst [vmem:[%s241_s16 + $0x10] sm:$0xff] %v1331_v17 }
 0x2a1   : > { %1854 = shalt.err (!%p1851_p7)
}
 0x2a2   : > { %s1855_s10 = scalar_lea.hbm %s2493_s27, 512  ;;  %s1859_s16 = scalar_lea.hbm %s2554_s5, 2048 }
 0x2a3   : > { %p1856_p9 = scmp.ne.s32.totalorder %s2493_s27, %s1855_s10  ;;  %p1860_p12 = scmp.lt.u32.totalorder %s2493_s27, %s2554_s5 }
 0x2a4   : > { %p1861_p13 = scmp.lt.u32.totalorder %s1859_s16, %s1855_s10  ;;  %p1863_p1 = scmp.lt.u32.totalorder %s1855_s10, %s2493_s27 }
 0x2a5   : > { %p1857_p10 = pnand %p1856_p9, %p2026_p3 }
 0x2a6   : > { %p1862_p0 = por %p1861_p13, %p1860_p12 }
 0x2a7   : > { %p1858_p11 = pneg %p1857_p10 }
 0x2a8   : > { %p1864_p2 = por %p1863_p1, %p1862_p0 }
 0x2aa   : > { %p1865_p4 = pnand %p1864_p2, %p1858_p11 }
 0x2ac   : > { %1868 = shalt.err (!%p1865_p4)
}
 0x2ad   : > { %s1942_s26 = smov 128   ;;  %s1943_s8 = smov 256  }
 0x2ae   : > { %s1944_s13 = smov 8  }
 0x2af   : > { %1681 = dma.vmem_to_hbm [thread:$0]  (%p2026_p3), %s2488_s17, 512, %s2493_s27, %s2497_s30, %s1942_s26, %s1943_s8, %s1944_s13  }
 0x2b0 PF: > { %p1687_p5 = scmp.ge.s32.totalorder %s1935_s25, 2  ;;  %s1367_s9 = sand.u32 1, %s1907_s18  }
 0x2b1   : > { %s1368_s12 = scalar_lea.sflag [#allocation5], %s1367_s9 }
 0x2b2   : > { %p1684_p6 = pnand %p1687_p5, %p2035_p8 }
 0x2b4   : > { %1902 = dma.done.wait (!%p1684_p6), %s1368_s12, 512  }
 0x2b5   : > { %1904 = vsyncadd (!%p1684_p6), %s1368_s12, 4294966784  ;;  %s18_s25 = sadd.s32 1, %s1935_s25   ;;  %s2565_s18 = smov %s1911_s19 }
 0x2b6   : > { %p15_p7 = scmp.ge.s32.totalorder %s18_s25, 6   ;;  %s2566_s19 = smov %s1915_s20 }
 0x2b7   : > { %s2567_s20 = smov %s2044_s11  ;;  %s2568_s21 = smov %s1927_s23 }
 0x2b8   : > { %s2569_s22 = smov %s1931_s24  ;;  %s2570_s23 = smov %s2573_s28 }
 0x2b9   : > { %s2571_s24 = smov %s2577_s29  ;;  %17 = sbr.rel (!%p15_p7) target bundleno = 5 (0x5), region = 77 }
 0x2c0   :  { %1373 = vsyncpa [#allocation5], 1 }
 0x2c1   :  { %1375 = vsyncpa [#allocation5 + $0x1], 1 }

</bundles_post_ra>
